<compile_context>
chip_gen: v7x
topology: tpu7x:2x2x1
jax: 0.10.0
libtpu: 0.0.40
codegen_flags: <defaults>
</compile_context>

<pallas_src>
import jax
import jax.numpy as jnp
from jax.experimental import pallas as pl
from jax.experimental.pallas import tpu as pltpu


def _round_up(n, m):
    return ((n + m - 1) // m) * m


def _cdiv(a, b):
    return -(-a // b)


def _vae_kernel(hidden_dim, latent_pad, input_pad):
    """Kernel closed over static (padded) dims."""
    H, Lp, Dp = hidden_dim, latent_pad, input_pad
    bf16 = jnp.bfloat16

    def kernel(x_ref, eps_ref, w1, w2, wheads, wd1, wd2, wd3, bias_ref, temp_ref,
               out_ref):
        x = x_ref[...]                      # [tb, D]   f32
        eps = eps_ref[...]                  # [tb, Lp]  f32 (padded cols are 0)
        t = temp_ref[0]                     # scalar f32 from SMEM

        def mm(a_bf16, w_ref):
            # bf16 MXU operands, f32 accumulation.
            return jnp.dot(a_bf16, w_ref[...], preferred_element_type=jnp.float32)

        # Packed bias slab: one bias per sublane row -> lane-0-aligned slices only.
        b1 = bias_ref[0:1, :H]
        b2 = bias_ref[1:2, :H]
        bh = bias_ref[2:3, :2 * Lp]
        bd1 = bias_ref[3:4, :H]
        bd2 = bias_ref[4:5, :H]
        bd3 = bias_ref[5:6, :Dp]

        # ---- encoder (Dropout -> identity, eval mode) ----
        h1 = jnp.maximum(mm(x.astype(bf16), w1) + b1, 0.0).astype(bf16)
        h2 = jnp.maximum(mm(h1, w2) + b2, 0.0).astype(bf16)

        # ---- fused latent heads: one matmul, mu at col 0, logvar at col Lp ----
        heads = mm(h2, wheads) + bh         # [tb, 2*Lp] f32
        mu = heads[:, :Lp]                  # 128-lane aligned slices
        logvar = heads[:, Lp:]

        # ---- reparameterize: z = mu + temperature * eps * exp(0.5 * logvar) ----
        std = jnp.exp(0.5 * logvar)         # EUP slot; padded cols -> exp(0)=1
        z = mu + (t * eps) * std            # padded cols: 0 + 0*1 = 0

        # ---- decoder (Dropout -> identity, eval mode) ----
        d1 = jnp.maximum(mm(z.astype(bf16), wd1) + bd1, 0.0).astype(bf16)
        d2 = jnp.maximum(mm(d1, wd2) + bd2, 0.0).astype(bf16)
        recon = mm(d2, wd3) + bd3           # [tb, Dp] f32 (padded cols are 0)

        # Single lane-dense, fully 128-aligned output slab: [recon | mu | logvar | z].
        out_ref[...] = jnp.concatenate([recon, mu, logvar, z], axis=-1)

    return kernel


def _pick_tiling(B, H):
    """Batch tile sized to VMEM budget; keep >=2 grid steps for big batches (v7x)."""
    cap = 512 if H <= 1024 else (256 if H <= 2048 else 128)
    Bp = _round_up(max(B, 1), 8)
    steps = max(1, _cdiv(Bp, cap))
    if steps == 1 and Bp >= 64:
        steps = 2                           # give both v7x TensorCores a tile
    block_b = _round_up(_cdiv(Bp, steps), 8)
    return block_b, steps


def vae_forward(x, eps, params, temperature=1.0, block_b=None):
    """x: [B, input_dim] f32, eps: [B, latent_dim] f32 (the randn_like noise).

    Returns (recon, mu, logvar, z), all f32, shapes matching the PyTorch module.
    """
    B, D = x.shape
    H = params["w1"].shape[1]
    L = params["latent_dim"]
    Lp = params["wd1"].shape[0]             # pad128(L)
    Dp = params["wd3"].shape[1]             # pad128(D)
    out_width = Dp + 3 * Lp

    if block_b is None:
        block_b, steps = _pick_tiling(B, H)
    else:
        assert block_b % 8 == 0
        steps = _cdiv(B, block_b)
    B_pad = block_b * steps

    x_p = x if B_pad == B else jnp.pad(x, ((0, B_pad - B), (0, 0)))
    eps_p = jnp.pad(eps, ((0, B_pad - B), (0, Lp - eps.shape[1])))
    temp = jnp.asarray([temperature], jnp.float32)

    weights = (params["w1"], params["w2"], params["w_heads"],
               params["wd1"], params["wd2"], params["wd3"])
    bias = params["bias"]

    # VMEM budget: weights (conservatively x2) + double-buffered io tiles + activations.
    weight_bytes = sum(int(w.size) * w.dtype.itemsize for w in weights)
    weight_bytes += int(bias.size) * bias.dtype.itemsize
    io_bytes = 2 * block_b * (D + Lp + out_width) * 4
    act_bytes = 8 * block_b * max(H, Dp, 2 * Lp) * 4
    need = 2 * weight_bytes + io_bytes + act_bytes
    try:
        phys_vmem = int(pltpu.get_tpu_info().vmem_capacity_bytes)
    except Exception:
        phys_vmem = 64 << 20                # v7x per-core floor
    vmem_limit = int(min(max(need * 3 // 2 + (2 << 20), 32 << 20),
                         int(phys_vmem * 0.75)))

    kernel = _vae_kernel(H, Lp, Dp)

    def build(single_buffer_weights):
        def const_spec(shape):
            # Batch-invariant: same block every step -> no re-DMA; single buffer
            # avoids doubling resident-weight VMEM.
            if single_buffer_weights:
                return pl.BlockSpec(shape, lambda b: (0, 0),
                                    pipeline_mode=pl.Buffered(1))
            return pl.BlockSpec(shape, lambda b: (0, 0))

        in_specs = [
            pl.BlockSpec((block_b, D), lambda b: (b, 0)),    # x
            pl.BlockSpec((block_b, Lp), lambda b: (b, 0)),   # eps
            const_spec(params["w1"].shape),
            const_spec(params["w2"].shape),
            const_spec(params["w_heads"].shape),
            const_spec(params["wd1"].shape),
            const_spec(params["wd2"].shape),
            const_spec(params["wd3"].shape),
            const_spec(params["bias"].shape),
            pl.BlockSpec(memory_space=pltpu.MemorySpace.SMEM),  # temperature scalar
        ]
        out_specs = pl.BlockSpec((block_b, out_width), lambda b: (b, 0))
        return pl.pallas_call(
            kernel,
            out_shape=jax.ShapeDtypeStruct((B_pad, out_width), jnp.float32),
            grid_spec=pltpu.PrefetchScalarGridSpec(
                num_scalar_prefetch=0,
                grid=(steps,),
                in_specs=in_specs,
                out_specs=out_specs,
            ),
            compiler_params=pltpu.CompilerParams(
                dimension_semantics=("parallel",),
                vmem_limit_bytes=vmem_limit,
            ),
        )

    args = (x_p, eps_p, *weights, bias, temp)
    try:
        out = build(True)(*args)
    except Exception:
        # pipeline_mode=pl.Buffered(1) unsupported on this jax build -> default pipelining.
        out = build(False)(*args)

    recon = out[:B, :D]
    mu = out[:B, Dp:Dp + L]
    logvar = out[:B, Dp + Lp:Dp + Lp + L]
    z = out[:B, Dp + 2 * Lp:Dp + 2 * Lp + L]
    return recon, mu, logvar, z


def init_params(key, input_dim, hidden_dim, latent_dim):
    """PyTorch-Linear-like uniform init; weights [in, out] bf16 with 128-lane padded
    heads / decoder-IO, biases packed one-per-row into an [8, W] f32 slab."""
    D, H, L = input_dim, hidden_dim, latent_dim
    Lp = _round_up(L, 128)
    Dp = _round_up(D, 128)
    W = _round_up(max(H, 2 * Lp, Dp), 128)

    def linear(k, fan_in, fan_out):
        kw, kb = jax.random.split(k)
        bound = 1.0 / jnp.sqrt(fan_in)
        w = jax.random.uniform(kw, (fan_in, fan_out), jnp.float32, -bound, bound)
        b = jax.random.uniform(kb, (fan_out,), jnp.float32, -bound, bound)
        return w, b

    keys = jax.random.split(key, 7)
    w1, b1 = linear(keys[0], D, H)        # encoder L1
    w2, b2 = linear(keys[1], H, H)        # encoder L2
    wmu, bmu = linear(keys[2], H, L)      # fc_mu
    wlv, blv = linear(keys[3], H, L)      # fc_logvar
    wd1, bd1 = linear(keys[4], L, H)      # decoder L1
    wd2, bd2 = linear(keys[5], H, H)      # decoder L2
    wd3, bd3 = linear(keys[6], H, D)      # decoder L3

    # Fused heads, 128-lane aligned: mu at col 0, logvar at col Lp.
    w_heads = jnp.zeros((H, 2 * Lp), jnp.float32)
    w_heads = w_heads.at[:, :L].set(wmu).at[:, Lp:Lp + L].set(wlv)
    # Decoder input padded along latent rows; decoder output padded along input cols.
    wd1_p = jnp.zeros((Lp, H), jnp.float32).at[:L, :].set(wd1)
    wd3_p = jnp.zeros((H, Dp), jnp.float32).at[:, :D].set(wd3)

    # Packed bias slab: one bias per sublane row, lane-0-aligned.
    bias = jnp.zeros((8, W), jnp.float32)
    bias = (bias.at[0, :H].set(b1)
                .at[1, :H].set(b2)
                .at[2, :L].set(bmu)
                .at[2, Lp:Lp + L].set(blv)
                .at[3, :H].set(bd1)
                .at[4, :H].set(bd2)
                .at[5, :D].set(bd3))

    bf16 = jnp.bfloat16
    return {
        "w1": w1.astype(bf16), "w2": w2.astype(bf16), "w_heads": w_heads.astype(bf16),
        "wd1": wd1_p.astype(bf16), "wd2": wd2.astype(bf16), "wd3": wd3_p.astype(bf16),
        "bias": bias, "latent_dim": L, "input_dim": D,
    }


def _ref_forward(x, eps, p, temperature=1.0):
    """Pure-JAX reference mirroring the kernel's bf16 operand rounding."""
    f32 = jnp.float32
    H = p["w1"].shape[1]
    L = p["latent_dim"]
    Lp = p["wd1"].shape[0]
    D = x.shape[1]
    b = p["bias"]

    def mm(a, w):
        return jnp.dot(a.astype(jnp.bfloat16).astype(f32), w.astype(f32))

    h1 = jnp.maximum(mm(x, p["w1"]) + b[0, :H], 0.0)
    h2 = jnp.maximum(mm(h1, p["w2"]) + b[1, :H], 0.0)
    mu = mm(h2, p["w_heads"][:, :L]) + b[2, :L]
    logvar = mm(h2, p["w_heads"][:, Lp:Lp + L]) + b[2, Lp:Lp + L]
    z = mu + temperature * eps * jnp.exp(0.5 * logvar)
    d1 = jnp.maximum(mm(z, p["wd1"][:L]) + b[3, :H], 0.0)
    d2 = jnp.maximum(mm(d1, p["wd2"]) + b[4, :H], 0.0)
    recon = mm(d2, p["wd3"][:, :D]) + b[5, :D]
    return recon, mu, logvar, z


if __name__ == "__main__":
    # Small shapes consistent with the module's forward.
    B, INPUT_DIM, HIDDEN_DIM, LATENT_DIM = 8, 32, 32, 16

    key = jax.random.PRNGKey(0)
    k_params, k_x, k_eps = jax.random.split(key, 3)

    params = init_params(k_params, INPUT_DIM, HIDDEN_DIM, LATENT_DIM)
    x = jax.random.normal(k_x, (B, INPUT_DIM), jnp.float32)
    eps = jax.random.normal(k_eps, (B, LATENT_DIM), jnp.float32)  # randn_like(std)

    ok = True
    for temp in (1.0, 0.7):   # runtime temperature -> no recompile per value
        recon, mu, logvar, z = vae_forward(x, eps, params, temperature=temp)
        jax.block_until_ready((recon, mu, logvar, z))
        r_ref, mu_ref, lv_ref, z_ref = _ref_forward(x, eps, params, temp)
        # bf16 MXU operands -> loosened tolerances vs pure-f32.
        ok &= bool(jnp.allclose(recon, r_ref, atol=2e-2, rtol=2e-2))
        ok &= bool(jnp.allclose(mu, mu_ref, atol=2e-2, rtol=2e-2))
        ok &= bool(jnp.allclose(logvar, lv_ref, atol=2e-2, rtol=2e-2))
        ok &= bool(jnp.allclose(z, z_ref, atol=2e-2, rtol=2e-2))
    assert ok, "kernel output mismatch vs reference"

    print("KERNEL_OK")
</pallas_src>

<mosaic_0001>
module attributes {stable_mosaic.version = 11 : i64} {
  func.func @kernel(%arg0: i32, %arg1: memref<8x32xf32, #tpu.memory_space<vmem>>, %arg2: memref<8x128xf32, #tpu.memory_space<vmem>>, %arg3: memref<32x32xbf16, #tpu.memory_space<vmem>>, %arg4: memref<32x32xbf16, #tpu.memory_space<vmem>>, %arg5: memref<32x256xbf16, #tpu.memory_space<vmem>>, %arg6: memref<128x32xbf16, #tpu.memory_space<vmem>>, %arg7: memref<32x32xbf16, #tpu.memory_space<vmem>>, %arg8: memref<32x128xbf16, #tpu.memory_space<vmem>>, %arg9: memref<8x256xf32, #tpu.memory_space<vmem>>, %arg10: memref<1xf32, #tpu.memory_space<smem>>, %arg11: memref<8x512xf32, #tpu.memory_space<vmem>>) attributes {dimension_semantics = [#tpu.dimension_semantics<parallel>], iteration_bounds = array<i64: 1>, scalar_prefetch = 0 : i64, scratch_operands = 0 : i64, tpu.core_type = #tpu.core_type<tc>, window_params = [{transform_indices = @transform_0, window_bounds = array<i64: 8, 32>}, {transform_indices = @transform_1, window_bounds = array<i64: 8, 128>}, {pipeline_mode = #tpu.pipeline_mode<synchronous>, transform_indices = @transform_2, window_bounds = array<i64: 32, 32>}, {pipeline_mode = #tpu.pipeline_mode<synchronous>, transform_indices = @transform_3, window_bounds = array<i64: 32, 32>}, {pipeline_mode = #tpu.pipeline_mode<synchronous>, transform_indices = @transform_4, window_bounds = array<i64: 32, 256>}, {pipeline_mode = #tpu.pipeline_mode<synchronous>, transform_indices = @transform_5, window_bounds = array<i64: 128, 32>}, {pipeline_mode = #tpu.pipeline_mode<synchronous>, transform_indices = @transform_6, window_bounds = array<i64: 32, 32>}, {pipeline_mode = #tpu.pipeline_mode<synchronous>, transform_indices = @transform_7, window_bounds = array<i64: 32, 128>}, {pipeline_mode = #tpu.pipeline_mode<synchronous>, transform_indices = @transform_8, window_bounds = array<i64: 8, 256>}, {transform_indices = @transform_9, window_bounds = array<i64: 1>}, {transform_indices = @transform_10, window_bounds = array<i64: 8, 512>}]} {
    %c0 = arith.constant 0 : index
    %c0_0 = arith.constant 0 : index
    %0 = vector.load %arg1[%c0, %c0_0] : memref<8x32xf32, #tpu.memory_space<vmem>>, vector<8x32xf32>
    %c0_1 = arith.constant 0 : index
    %c0_2 = arith.constant 0 : index
    %1 = vector.load %arg2[%c0_1, %c0_2] : memref<8x128xf32, #tpu.memory_space<vmem>>, vector<8x128xf32>
    %c0_3 = arith.constant 0 : index
    %2 = memref.load %arg10[%c0_3] : memref<1xf32, #tpu.memory_space<smem>>
    %c0_4 = arith.constant 0 : index
    %c0_5 = arith.constant 0 : index
    %3 = vector.load %arg9[%c0_4, %c0_5] : memref<8x256xf32, #tpu.memory_space<vmem>>, vector<1x32xf32>
    %c1 = arith.constant 1 : index
    %c0_6 = arith.constant 0 : index
    %4 = vector.load %arg9[%c1, %c0_6] : memref<8x256xf32, #tpu.memory_space<vmem>>, vector<1x32xf32>
    %c2 = arith.constant 2 : index
    %c0_7 = arith.constant 0 : index
    %5 = vector.load %arg9[%c2, %c0_7] : memref<8x256xf32, #tpu.memory_space<vmem>>, vector<1x256xf32>
    %c3 = arith.constant 3 : index
    %c0_8 = arith.constant 0 : index
    %6 = vector.load %arg9[%c3, %c0_8] : memref<8x256xf32, #tpu.memory_space<vmem>>, vector<1x32xf32>
    %c4 = arith.constant 4 : index
    %c0_9 = arith.constant 0 : index
    %7 = vector.load %arg9[%c4, %c0_9] : memref<8x256xf32, #tpu.memory_space<vmem>>, vector<1x32xf32>
    %c5 = arith.constant 5 : index
    %c0_10 = arith.constant 0 : index
    %8 = vector.load %arg9[%c5, %c0_10] : memref<8x256xf32, #tpu.memory_space<vmem>>, vector<1x128xf32>
    %9 = arith.truncf %0 : vector<8x32xf32> to vector<8x32xbf16>
    %c0_11 = arith.constant 0 : index
    %c0_12 = arith.constant 0 : index
    %10 = vector.load %arg3[%c0_11, %c0_12] : memref<32x32xbf16, #tpu.memory_space<vmem>>, vector<32x32xbf16>
    %cst = arith.constant dense<0.000000e+00> : vector<8x32xf32>
    %11 = tpu.matmul %9, %10, %cst {dimension_numbers = #tpu.dot_dimension_numbers<[1], [0], [0], [1], [0, 0, 1, 1], [], []>} : vector<8x32xbf16>, vector<32x32xbf16>, vector<8x32xf32> -> vector<8x32xf32>
    %12 = vector.broadcast %3 : vector<1x32xf32> to vector<8x32xf32>
    %13 = arith.addf %11, %12 : vector<8x32xf32>
    %cst_13 = arith.constant 0.000000e+00 : f32
    %14 = vector.broadcast %cst_13 : f32 to vector<8x32xf32>
    %15 = arith.maximumf %13, %14 : vector<8x32xf32>
    %16 = arith.truncf %15 : vector<8x32xf32> to vector<8x32xbf16>
    %c0_14 = arith.constant 0 : index
    %c0_15 = arith.constant 0 : index
    %17 = vector.load %arg4[%c0_14, %c0_15] : memref<32x32xbf16, #tpu.memory_space<vmem>>, vector<32x32xbf16>
    %cst_16 = arith.constant dense<0.000000e+00> : vector<8x32xf32>
    %18 = tpu.matmul %16, %17, %cst_16 {dimension_numbers = #tpu.dot_dimension_numbers<[1], [0], [0], [1], [0, 0, 1, 1], [], []>} : vector<8x32xbf16>, vector<32x32xbf16>, vector<8x32xf32> -> vector<8x32xf32>
    %19 = vector.broadcast %4 : vector<1x32xf32> to vector<8x32xf32>
    %20 = arith.addf %18, %19 : vector<8x32xf32>
    %cst_17 = arith.constant 0.000000e+00 : f32
    %21 = vector.broadcast %cst_17 : f32 to vector<8x32xf32>
    %22 = arith.maximumf %20, %21 : vector<8x32xf32>
    %23 = arith.truncf %22 : vector<8x32xf32> to vector<8x32xbf16>
    %c0_18 = arith.constant 0 : index
    %c0_19 = arith.constant 0 : index
    %24 = vector.load %arg5[%c0_18, %c0_19] : memref<32x256xbf16, #tpu.memory_space<vmem>>, vector<32x256xbf16>
    %cst_20 = arith.constant dense<0.000000e+00> : vector<8x256xf32>
    %25 = tpu.matmul %23, %24, %cst_20 {dimension_numbers = #tpu.dot_dimension_numbers<[1], [0], [0], [1], [0, 0, 1, 1], [], []>} : vector<8x32xbf16>, vector<32x256xbf16>, vector<8x256xf32> -> vector<8x256xf32>
    %26 = vector.broadcast %5 : vector<1x256xf32> to vector<8x256xf32>
    %27 = arith.addf %25, %26 : vector<8x256xf32>
    %28 = vector.extract_strided_slice %27 {offsets = [0, 0], sizes = [8, 128], strides = [1, 1]} : vector<8x256xf32> to vector<8x128xf32>
    %29 = vector.extract_strided_slice %27 {offsets = [0, 128], sizes = [8, 128], strides = [1, 1]} : vector<8x256xf32> to vector<8x128xf32>
    %cst_21 = arith.constant 5.000000e-01 : f32
    %30 = vector.broadcast %cst_21 : f32 to vector<8x128xf32>
    %31 = arith.mulf %30, %29 : vector<8x128xf32>
    %32 = math.exp %31 : vector<8x128xf32>
    %33 = vector.broadcast %2 : f32 to vector<8x128xf32>
    %34 = arith.mulf %33, %1 : vector<8x128xf32>
    %35 = arith.mulf %34, %32 : vector<8x128xf32>
    %36 = arith.addf %28, %35 : vector<8x128xf32>
    %37 = arith.truncf %36 : vector<8x128xf32> to vector<8x128xbf16>
    %c0_22 = arith.constant 0 : index
    %c0_23 = arith.constant 0 : index
    %38 = vector.load %arg6[%c0_22, %c0_23] : memref<128x32xbf16, #tpu.memory_space<vmem>>, vector<128x32xbf16>
    %cst_24 = arith.constant dense<0.000000e+00> : vector<8x32xf32>
    %39 = tpu.matmul %37, %38, %cst_24 {dimension_numbers = #tpu.dot_dimension_numbers<[1], [0], [0], [1], [0, 0, 1, 1], [], []>} : vector<8x128xbf16>, vector<128x32xbf16>, vector<8x32xf32> -> vector<8x32xf32>
    %40 = vector.broadcast %6 : vector<1x32xf32> to vector<8x32xf32>
    %41 = arith.addf %39, %40 : vector<8x32xf32>
    %cst_25 = arith.constant 0.000000e+00 : f32
    %42 = vector.broadcast %cst_25 : f32 to vector<8x32xf32>
    %43 = arith.maximumf %41, %42 : vector<8x32xf32>
    %44 = arith.truncf %43 : vector<8x32xf32> to vector<8x32xbf16>
    %c0_26 = arith.constant 0 : index
    %c0_27 = arith.constant 0 : index
    %45 = vector.load %arg7[%c0_26, %c0_27] : memref<32x32xbf16, #tpu.memory_space<vmem>>, vector<32x32xbf16>
    %cst_28 = arith.constant dense<0.000000e+00> : vector<8x32xf32>
    %46 = tpu.matmul %44, %45, %cst_28 {dimension_numbers = #tpu.dot_dimension_numbers<[1], [0], [0], [1], [0, 0, 1, 1], [], []>} : vector<8x32xbf16>, vector<32x32xbf16>, vector<8x32xf32> -> vector<8x32xf32>
    %47 = vector.broadcast %7 : vector<1x32xf32> to vector<8x32xf32>
    %48 = arith.addf %46, %47 : vector<8x32xf32>
    %cst_29 = arith.constant 0.000000e+00 : f32
    %49 = vector.broadcast %cst_29 : f32 to vector<8x32xf32>
    %50 = arith.maximumf %48, %49 : vector<8x32xf32>
    %51 = arith.truncf %50 : vector<8x32xf32> to vector<8x32xbf16>
    %c0_30 = arith.constant 0 : index
    %c0_31 = arith.constant 0 : index
    %52 = vector.load %arg8[%c0_30, %c0_31] : memref<32x128xbf16, #tpu.memory_space<vmem>>, vector<32x128xbf16>
    %cst_32 = arith.constant dense<0.000000e+00> : vector<8x128xf32>
    %53 = tpu.matmul %51, %52, %cst_32 {dimension_numbers = #tpu.dot_dimension_numbers<[1], [0], [0], [1], [0, 0, 1, 1], [], []>} : vector<8x32xbf16>, vector<32x128xbf16>, vector<8x128xf32> -> vector<8x128xf32>
    %54 = vector.broadcast %8 : vector<1x128xf32> to vector<8x128xf32>
    %55 = arith.addf %53, %54 : vector<8x128xf32>
    %56 = tpu.concatenate %55, %28, %29, %36 in 1 : vector<8x128xf32>, vector<8x128xf32>, vector<8x128xf32>, vector<8x128xf32> -> vector<8x512xf32>
    %c0_33 = arith.constant 0 : index
    %c0_34 = arith.constant 0 : index
    %57 = vector.load %arg11[%c0_33, %c0_34] : memref<8x512xf32, #tpu.memory_space<vmem>>, vector<8x512xf32>
    tpu.vector_store %arg11[%c0_33, %c0_34], %56 {strides = array<i32>} : memref<8x512xf32, #tpu.memory_space<vmem>>, vector<8x512xf32>,
    return
  }
  func.func @transform_0(%arg0: i32) -> (i32, i32) {
    %c0_i32 = arith.constant 0 : i32
    %c0_i32_0 = arith.constant 0 : i32
    return %arg0, %c0_i32 : i32, i32
  }
  func.func @transform_1(%arg0: i32) -> (i32, i32) {
    %c0_i32 = arith.constant 0 : i32
    %c0_i32_0 = arith.constant 0 : i32
    return %arg0, %c0_i32 : i32, i32
  }
  func.func @transform_2(%arg0: i32) -> (i32, i32) {
    %c0_i32 = arith.constant 0 : i32
    %c0_i32_0 = arith.constant 0 : i32
    %c0_i32_1 = arith.constant 0 : i32
    return %c0_i32, %c0_i32_0 : i32, i32
  }
  func.func @transform_3(%arg0: i32) -> (i32, i32) {
    %c0_i32 = arith.constant 0 : i32
    %c0_i32_0 = arith.constant 0 : i32
    %c0_i32_1 = arith.constant 0 : i32
    return %c0_i32, %c0_i32_0 : i32, i32
  }
  func.func @transform_4(%arg0: i32) -> (i32, i32) {
    %c0_i32 = arith.constant 0 : i32
    %c0_i32_0 = arith.constant 0 : i32
    %c0_i32_1 = arith.constant 0 : i32
    return %c0_i32, %c0_i32_0 : i32, i32
  }
  func.func @transform_5(%arg0: i32) -> (i32, i32) {
    %c0_i32 = arith.constant 0 : i32
    %c0_i32_0 = arith.constant 0 : i32
    %c0_i32_1 = arith.constant 0 : i32
    return %c0_i32, %c0_i32_0 : i32, i32
  }
  func.func @transform_6(%arg0: i32) -> (i32, i32) {
    %c0_i32 = arith.constant 0 : i32
    %c0_i32_0 = arith.constant 0 : i32
    %c0_i32_1 = arith.constant 0 : i32
    return %c0_i32, %c0_i32_0 : i32, i32
  }
  func.func @transform_7(%arg0: i32) -> (i32, i32) {
    %c0_i32 = arith.constant 0 : i32
    %c0_i32_0 = arith.constant 0 : i32
    %c0_i32_1 = arith.constant 0 : i32
    return %c0_i32, %c0_i32_0 : i32, i32
  }
  func.func @transform_8(%arg0: i32) -> (i32, i32) {
    %c0_i32 = arith.constant 0 : i32
    %c0_i32_0 = arith.constant 0 : i32
    %c0_i32_1 = arith.constant 0 : i32
    return %c0_i32, %c0_i32_0 : i32, i32
  }
  func.func @transform_9(%arg0: i32) -> i32 {
    %c0_i32 = arith.constant 0 : i32
    %c0_i32_0 = arith.constant 0 : i32
    return %c0_i32 : i32
  }
  func.func @transform_10(%arg0: i32) -> (i32, i32) {
    %c0_i32 = arith.constant 0 : i32
    %c0_i32_0 = arith.constant 0 : i32
    return %arg0, %c0_i32 : i32, i32
  }
}

module attributes {stable_mosaic.version = 11 : i64} {
  func.func @kernel(%arg0: i32, %arg1: memref<8x32xf32, #tpu.memory_space<vmem>>, %arg2: memref<8x128xf32, #tpu.memory_space<vmem>>, %arg3: memref<32x32xbf16, #tpu.memory_space<vmem>>, %arg4: memref<32x32xbf16, #tpu.memory_space<vmem>>, %arg5: memref<32x256xbf16, #tpu.memory_space<vmem>>, %arg6: memref<128x32xbf16, #tpu.memory_space<vmem>>, %arg7: memref<32x32xbf16, #tpu.memory_space<vmem>>, %arg8: memref<32x128xbf16, #tpu.memory_space<vmem>>, %arg9: memref<8x256xf32, #tpu.memory_space<vmem>>, %arg10: memref<1xf32, #tpu.memory_space<smem>>, %arg11: memref<8x512xf32, #tpu.memory_space<vmem>>) attributes {dimension_semantics = [#tpu.dimension_semantics<parallel>], iteration_bounds = array<i64: 1>, scalar_prefetch = 0 : i64, scratch_operands = 0 : i64, tpu.core_type = #tpu.core_type<tc>, window_params = [{transform_indices = @transform_0, window_bounds = array<i64: 8, 32>}, {transform_indices = @transform_1, window_bounds = array<i64: 8, 128>}, {pipeline_mode = #tpu.pipeline_mode<synchronous>, transform_indices = @transform_2, window_bounds = array<i64: 32, 32>}, {pipeline_mode = #tpu.pipeline_mode<synchronous>, transform_indices = @transform_3, window_bounds = array<i64: 32, 32>}, {pipeline_mode = #tpu.pipeline_mode<synchronous>, transform_indices = @transform_4, window_bounds = array<i64: 32, 256>}, {pipeline_mode = #tpu.pipeline_mode<synchronous>, transform_indices = @transform_5, window_bounds = array<i64: 128, 32>}, {pipeline_mode = #tpu.pipeline_mode<synchronous>, transform_indices = @transform_6, window_bounds = array<i64: 32, 32>}, {pipeline_mode = #tpu.pipeline_mode<synchronous>, transform_indices = @transform_7, window_bounds = array<i64: 32, 128>}, {pipeline_mode = #tpu.pipeline_mode<synchronous>, transform_indices = @transform_8, window_bounds = array<i64: 8, 256>}, {transform_indices = @transform_9, window_bounds = array<i64: 1>}, {transform_indices = @transform_10, window_bounds = array<i64: 8, 512>}]} {
    %c0 = arith.constant 0 : index
    %c0_0 = arith.constant 0 : index
    %0 = vector.load %arg1[%c0, %c0_0] : memref<8x32xf32, #tpu.memory_space<vmem>>, vector<8x32xf32>
    %c0_1 = arith.constant 0 : index
    %c0_2 = arith.constant 0 : index
    %1 = vector.load %arg2[%c0_1, %c0_2] : memref<8x128xf32, #tpu.memory_space<vmem>>, vector<8x128xf32>
    %c0_3 = arith.constant 0 : index
    %2 = memref.load %arg10[%c0_3] : memref<1xf32, #tpu.memory_space<smem>>
    %c0_4 = arith.constant 0 : index
    %c0_5 = arith.constant 0 : index
    %3 = vector.load %arg9[%c0_4, %c0_5] : memref<8x256xf32, #tpu.memory_space<vmem>>, vector<1x32xf32>
    %c1 = arith.constant 1 : index
    %c0_6 = arith.constant 0 : index
    %4 = vector.load %arg9[%c1, %c0_6] : memref<8x256xf32, #tpu.memory_space<vmem>>, vector<1x32xf32>
    %c2 = arith.constant 2 : index
    %c0_7 = arith.constant 0 : index
    %5 = vector.load %arg9[%c2, %c0_7] : memref<8x256xf32, #tpu.memory_space<vmem>>, vector<1x256xf32>
    %c3 = arith.constant 3 : index
    %c0_8 = arith.constant 0 : index
    %6 = vector.load %arg9[%c3, %c0_8] : memref<8x256xf32, #tpu.memory_space<vmem>>, vector<1x32xf32>
    %c4 = arith.constant 4 : index
    %c0_9 = arith.constant 0 : index
    %7 = vector.load %arg9[%c4, %c0_9] : memref<8x256xf32, #tpu.memory_space<vmem>>, vector<1x32xf32>
    %c5 = arith.constant 5 : index
    %c0_10 = arith.constant 0 : index
    %8 = vector.load %arg9[%c5, %c0_10] : memref<8x256xf32, #tpu.memory_space<vmem>>, vector<1x128xf32>
    %9 = arith.truncf %0 : vector<8x32xf32> to vector<8x32xbf16>
    %c0_11 = arith.constant 0 : index
    %c0_12 = arith.constant 0 : index
    %10 = vector.load %arg3[%c0_11, %c0_12] : memref<32x32xbf16, #tpu.memory_space<vmem>>, vector<32x32xbf16>
    %cst = arith.constant dense<0.000000e+00> : vector<8x32xf32>
    %11 = tpu.matmul %9, %10, %cst {dimension_numbers = #tpu.dot_dimension_numbers<[1], [0], [0], [1], [0, 0, 1, 1], [], []>} : vector<8x32xbf16>, vector<32x32xbf16>, vector<8x32xf32> -> vector<8x32xf32>
    %12 = vector.broadcast %3 : vector<1x32xf32> to vector<8x32xf32>
    %13 = arith.addf %11, %12 : vector<8x32xf32>
    %cst_13 = arith.constant 0.000000e+00 : f32
    %14 = vector.broadcast %cst_13 : f32 to vector<8x32xf32>
    %15 = arith.maximumf %13, %14 : vector<8x32xf32>
    %16 = arith.truncf %15 : vector<8x32xf32> to vector<8x32xbf16>
    %c0_14 = arith.constant 0 : index
    %c0_15 = arith.constant 0 : index
    %17 = vector.load %arg4[%c0_14, %c0_15] : memref<32x32xbf16, #tpu.memory_space<vmem>>, vector<32x32xbf16>
    %cst_16 = arith.constant dense<0.000000e+00> : vector<8x32xf32>
    %18 = tpu.matmul %16, %17, %cst_16 {dimension_numbers = #tpu.dot_dimension_numbers<[1], [0], [0], [1], [0, 0, 1, 1], [], []>} : vector<8x32xbf16>, vector<32x32xbf16>, vector<8x32xf32> -> vector<8x32xf32>
    %19 = vector.broadcast %4 : vector<1x32xf32> to vector<8x32xf32>
    %20 = arith.addf %18, %19 : vector<8x32xf32>
    %cst_17 = arith.constant 0.000000e+00 : f32
    %21 = vector.broadcast %cst_17 : f32 to vector<8x32xf32>
    %22 = arith.maximumf %20, %21 : vector<8x32xf32>
    %23 = arith.truncf %22 : vector<8x32xf32> to vector<8x32xbf16>
    %c0_18 = arith.constant 0 : index
    %c0_19 = arith.constant 0 : index
    %24 = vector.load %arg5[%c0_18, %c0_19] : memref<32x256xbf16, #tpu.memory_space<vmem>>, vector<32x256xbf16>
    %cst_20 = arith.constant dense<0.000000e+00> : vector<8x256xf32>
    %25 = tpu.matmul %23, %24, %cst_20 {dimension_numbers = #tpu.dot_dimension_numbers<[1], [0], [0], [1], [0, 0, 1, 1], [], []>} : vector<8x32xbf16>, vector<32x256xbf16>, vector<8x256xf32> -> vector<8x256xf32>
    %26 = vector.broadcast %5 : vector<1x256xf32> to vector<8x256xf32>
    %27 = arith.addf %25, %26 : vector<8x256xf32>
    %28 = vector.extract_strided_slice %27 {offsets = [0, 0], sizes = [8, 128], strides = [1, 1]} : vector<8x256xf32> to vector<8x128xf32>
    %29 = vector.extract_strided_slice %27 {offsets = [0, 128], sizes = [8, 128], strides = [1, 1]} : vector<8x256xf32> to vector<8x128xf32>
    %cst_21 = arith.constant 5.000000e-01 : f32
    %30 = vector.broadcast %cst_21 : f32 to vector<8x128xf32>
    %31 = arith.mulf %30, %29 : vector<8x128xf32>
    %32 = math.exp %31 : vector<8x128xf32>
    %33 = vector.broadcast %2 : f32 to vector<8x128xf32>
    %34 = arith.mulf %33, %1 : vector<8x128xf32>
    %35 = arith.mulf %34, %32 : vector<8x128xf32>
    %36 = arith.addf %28, %35 : vector<8x128xf32>
    %37 = arith.truncf %36 : vector<8x128xf32> to vector<8x128xbf16>
    %c0_22 = arith.constant 0 : index
    %c0_23 = arith.constant 0 : index
    %38 = vector.load %arg6[%c0_22, %c0_23] : memref<128x32xbf16, #tpu.memory_space<vmem>>, vector<128x32xbf16>
    %cst_24 = arith.constant dense<0.000000e+00> : vector<8x32xf32>
    %39 = tpu.matmul %37, %38, %cst_24 {dimension_numbers = #tpu.dot_dimension_numbers<[1], [0], [0], [1], [0, 0, 1, 1], [], []>} : vector<8x128xbf16>, vector<128x32xbf16>, vector<8x32xf32> -> vector<8x32xf32>
    %40 = vector.broadcast %6 : vector<1x32xf32> to vector<8x32xf32>
    %41 = arith.addf %39, %40 : vector<8x32xf32>
    %cst_25 = arith.constant 0.000000e+00 : f32
    %42 = vector.broadcast %cst_25 : f32 to vector<8x32xf32>
    %43 = arith.maximumf %41, %42 : vector<8x32xf32>
    %44 = arith.truncf %43 : vector<8x32xf32> to vector<8x32xbf16>
    %c0_26 = arith.constant 0 : index
    %c0_27 = arith.constant 0 : index
    %45 = vector.load %arg7[%c0_26, %c0_27] : memref<32x32xbf16, #tpu.memory_space<vmem>>, vector<32x32xbf16>
    %cst_28 = arith.constant dense<0.000000e+00> : vector<8x32xf32>
    %46 = tpu.matmul %44, %45, %cst_28 {dimension_numbers = #tpu.dot_dimension_numbers<[1], [0], [0], [1], [0, 0, 1, 1], [], []>} : vector<8x32xbf16>, vector<32x32xbf16>, vector<8x32xf32> -> vector<8x32xf32>
    %47 = vector.broadcast %7 : vector<1x32xf32> to vector<8x32xf32>
    %48 = arith.addf %46, %47 : vector<8x32xf32>
    %cst_29 = arith.constant 0.000000e+00 : f32
    %49 = vector.broadcast %cst_29 : f32 to vector<8x32xf32>
    %50 = arith.maximumf %48, %49 : vector<8x32xf32>
    %51 = arith.truncf %50 : vector<8x32xf32> to vector<8x32xbf16>
    %c0_30 = arith.constant 0 : index
    %c0_31 = arith.constant 0 : index
    %52 = vector.load %arg8[%c0_30, %c0_31] : memref<32x128xbf16, #tpu.memory_space<vmem>>, vector<32x128xbf16>
    %cst_32 = arith.constant dense<0.000000e+00> : vector<8x128xf32>
    %53 = tpu.matmul %51, %52, %cst_32 {dimension_numbers = #tpu.dot_dimension_numbers<[1], [0], [0], [1], [0, 0, 1, 1], [], []>} : vector<8x32xbf16>, vector<32x128xbf16>, vector<8x128xf32> -> vector<8x128xf32>
    %54 = vector.broadcast %8 : vector<1x128xf32> to vector<8x128xf32>
    %55 = arith.addf %53, %54 : vector<8x128xf32>
    %56 = tpu.concatenate %55, %28, %29, %36 in 1 : vector<8x128xf32>, vector<8x128xf32>, vector<8x128xf32>, vector<8x128xf32> -> vector<8x512xf32>
    %c0_33 = arith.constant 0 : index
    %c0_34 = arith.constant 0 : index
    %57 = vector.load %arg11[%c0_33, %c0_34] : memref<8x512xf32, #tpu.memory_space<vmem>>, vector<8x512xf32>
    tpu.vector_store %arg11[%c0_33, %c0_34], %56 {strides = array<i32>} : memref<8x512xf32, #tpu.memory_space<vmem>>, vector<8x512xf32>,
    return
  }
  func.func @transform_0(%arg0: i32) -> (i32, i32) {
    %c0_i32 = arith.constant 0 : i32
    %c0_i32_0 = arith.constant 0 : i32
    return %arg0, %c0_i32 : i32, i32
  }
  func.func @transform_1(%arg0: i32) -> (i32, i32) {
    %c0_i32 = arith.constant 0 : i32
    %c0_i32_0 = arith.constant 0 : i32
    return %arg0, %c0_i32 : i32, i32
  }
  func.func @transform_2(%arg0: i32) -> (i32, i32) {
    %c0_i32 = arith.constant 0 : i32
    %c0_i32_0 = arith.constant 0 : i32
    %c0_i32_1 = arith.constant 0 : i32
    return %c0_i32, %c0_i32_0 : i32, i32
  }
  func.func @transform_3(%arg0: i32) -> (i32, i32) {
    %c0_i32 = arith.constant 0 : i32
    %c0_i32_0 = arith.constant 0 : i32
    %c0_i32_1 = arith.constant 0 : i32
    return %c0_i32, %c0_i32_0 : i32, i32
  }
  func.func @transform_4(%arg0: i32) -> (i32, i32) {
    %c0_i32 = arith.constant 0 : i32
    %c0_i32_0 = arith.constant 0 : i32
    %c0_i32_1 = arith.constant 0 : i32
    return %c0_i32, %c0_i32_0 : i32, i32
  }
  func.func @transform_5(%arg0: i32) -> (i32, i32) {
    %c0_i32 = arith.constant 0 : i32
    %c0_i32_0 = arith.constant 0 : i32
    %c0_i32_1 = arith.constant 0 : i32
    return %c0_i32, %c0_i32_0 : i32, i32
  }
  func.func @transform_6(%arg0: i32) -> (i32, i32) {
    %c0_i32 = arith.constant 0 : i32
    %c0_i32_0 = arith.constant 0 : i32
    %c0_i32_1 = arith.constant 0 : i32
    return %c0_i32, %c0_i32_0 : i32, i32
  }
  func.func @transform_7(%arg0: i32) -> (i32, i32) {
    %c0_i32 = arith.constant 0 : i32
    %c0_i32_0 = arith.constant 0 : i32
    %c0_i32_1 = arith.constant 0 : i32
    return %c0_i32, %c0_i32_0 : i32, i32
  }
  func.func @transform_8(%arg0: i32) -> (i32, i32) {
    %c0_i32 = arith.constant 0 : i32
    %c0_i32_0 = arith.constant 0 : i32
    %c0_i32_1 = arith.constant 0 : i32
    return %c0_i32, %c0_i32_0 : i32, i32
  }
  func.func @transform_9(%arg0: i32) -> i32 {
    %c0_i32 = arith.constant 0 : i32
    %c0_i32_0 = arith.constant 0 : i32
    return %c0_i32 : i32
  }
  func.func @transform_10(%arg0: i32) -> (i32, i32) {
    %c0_i32 = arith.constant 0 : i32
    %c0_i32_0 = arith.constant 0 : i32
    return %arg0, %c0_i32 : i32, i32
  }
}

</mosaic_0001>

<bundles_post_ra>
// kernel: tpu_custom_call.1
= control target key start
LH: loop header
LB: loop body
LE: loop exit
PB: predicated region body
PF: predicated region fallthrough
CT: control target
= control target key end

     0   :  { %16 = vsyncpa [#allocation4], 0  ;;  %s939_s0 = inlined_call_operand.hbm [shape: f32[8,32], index: 0, kind: input, shape index: {}]   ;;  %s940_s1 = inlined_call_operand.hbm [shape: f32[8,128], index: 1, kind: input, shape index: {}]   ;;  %s941_s2 = inlined_call_operand.vmem [shape: bf16[32,32], index: 2, kind: input, shape index: {}]   ;;  %s942_s3 = inlined_call_operand.vmem [shape: bf16[32,32], index: 3, kind: input, shape index: {}]   ;;  %s943_s4 = inlined_call_operand.vmem [shape: bf16[32,256], index: 4, kind: input, shape index: {}]   ;;  %s944_s5 = inlined_call_operand.vmem [shape: bf16[128,32], index: 5, kind: input, shape index: {}]   ;;  %s945_s6 = inlined_call_operand.vmem [shape: bf16[32,32], index: 6, kind: input, shape index: {}]   ;;  %s946_s7 = inlined_call_operand.vmem [shape: bf16[32,128], index: 7, kind: input, shape index: {}]   ;;  %s947_s8 = inlined_call_operand.vmem [shape: f32[8,256], index: 8, kind: input, shape index: {}]   ;;  %s948_s9 = inlined_call_operand.<no memory space> [shape: f32[1], index: 9, kind: input, shape index: {}]   ;;  %s949_s10 = inlined_call_operand.hbm [shape: f32[8,512], index: 10, kind: output, shape index: {}]  }
   0x1   :  { %17 = vsyncpa [#allocation7], 0 }
   0x2   :  { %18 = vsyncpa [#allocation5], 0  ;;  %s730_s13 = smov [#allocation3]   ;;  %s731_s15 = smov [#allocation6]  }
   0x3   :  { %s25_s14 = sshll.u32 %s730_s13, 4  ;;  %s35_s16 = sshll.u32 %s731_s15, 4  ;;  %s26_s14 = int_to_ptr.vmem [resolvable:$true] %s25_s14  ;;  %s36_s16 = int_to_ptr.vmem [resolvable:$true] %s35_s16 }
   0x4   :  { %s658_s19 = scalar_lea.hbm %s939_s0, 128 }
   0x5   :  { %p659_p0 = scmp.ne.s32.totalorder %s939_s0, %s658_s19  ;;  %p662_p1 = scmp.lt.u32.totalorder %s658_s19, %s939_s0 }
   0x7   :  { %p664_p2 = pnand %p662_p1, %p659_p0 }
   0x9   :  { %667 = shalt.err (!%p664_p2)
}
   0xa   :  { %s668_s24 = scalar_lea.vmem %s26_s14, 128  ;;  %p673_p4 = scmp.lt.s32.totalorder %s26_s14, %s26_s14 }
   0xb   :  { %p669_p3 = scmp.ne.s32.totalorder %s26_s14, %s668_s24  ;;  %p674_p5 = scmp.lt.s32.totalorder %s668_s24, %s668_s24 }
   0xd   :  { %p675_p6 = por %p674_p5, %p673_p4 }
   0xf   :  { %p676_p7 = pnand %p675_p6, %p669_p3 }
  0x11   :  { %679 = shalt.err (!%p676_p7)
}
  0x12   :  { %28 = dma.hbm_to_vmem [thread:$0]  %s939_s0, 128, %s26_s14, [#allocation4]  }
  0x13   :  { %s680_s29 = scalar_lea.hbm %s940_s1, 128 }
  0x14   :  { %p681_p8 = scmp.ne.s32.totalorder %s940_s1, %s680_s29  ;;  %p684_p9 = scmp.lt.u32.totalorder %s680_s29, %s940_s1 }
  0x16   :  { %p686_p10 = pnand %p684_p9, %p681_p8 }
  0x18   :  { %689 = shalt.err (!%p686_p10)
}
  0x19   :  { %s690_s15 = scalar_lea.vmem %s36_s16, 128  ;;  %p695_p12 = scmp.lt.s32.totalorder %s36_s16, %s36_s16 }
  0x1a   :  { %p691_p11 = scmp.ne.s32.totalorder %s36_s16, %s690_s15  ;;  %p696_p13 = scmp.lt.s32.totalorder %s690_s15, %s690_s15 }
  0x1c   :  { %p697_p0 = por %p696_p13, %p695_p12 }
  0x1e   :  { %p698_p1 = pnand %p697_p0, %p691_p11 }
  0x20   :  { %701 = shalt.err (!%p698_p1)
}
  0x21   :  { %38 = dma.hbm_to_vmem [thread:$0]  %s940_s1, 128, %s36_s16, [#allocation7]  }
  0x22   :  { %724 = dma.done.wait [#allocation4], 128  }
  0x23   :  { %725 = vsyncadd [#allocation4], 4294967168 }
  0x24   :  { %726 = dma.done.wait [#allocation7], 128  }
  0x25   :  { %727 = vsyncadd [#allocation7], 4294967168  ;;  %v732_v0 = vmov 0.0   ;;  %vm733_vm0 = vmmov 0   ;;  %v634_v1 = vld [vmem:[%s941_s2] sm:$0xff]   ;;  %v635_v2 = vld [vmem:[%s941_s2 + $0x8] sm:$0xff]   ;;  %v201_v37 = vlaneseq  ;;  %v278_v53 = vstv %s948_s9 }
  0x26   :  { %576 = vmatprep.subr.bf16.mxu0 %v732_v0  ;;  %580 = vmatprep.mubr.msk.bf16.mxu0 %vm733_vm0, %v732_v0  ;;  %v62_v3 = vld [vmem:[#allocation3] sm:$0xff]  ;;  %vm89_vm1 = vcmask 261120   ;;  %v637_v6 = vld [vmem:[%s942_s3 + $0x8] sm:$0xff]   ;;  %v643_v17 = vld [vmem:[%s943_s4 + $0x14] ss:$8 sps:$4 sm:$0xff]   ;;  %v734_v19 = vmov 0  }
  0x27   :  { %584 = vmatprep.subr.bf16.mxu1 %v732_v0  ;;  %588 = vmatprep.mubr.msk.bf16.mxu1 %vm733_vm0, %v732_v0  ;;  %v72_v4 = vpack.c.bf16 %v62_v3, %v62_v3  ;;  %v636_v5 = vld [vmem:[%s942_s3] sm:$0xff]   ;;  %v641_v18 = vld [vmem:[%s943_s4 + $0x10] ss:$8 sps:$4 sm:$0xff]   ;;  %v645_v21 = vld [vmem:[%s944_s5 + $0x8] sm:$0xff]   ;;  %v202_v38 = vshrl.u32 %v201_v37, 7  ;;  %s735_s18 = smov [#allocation8]  }
  0x28   :  { %577 = vmatpush3.bf16.msra.mxu0 %v634_v1  ;;  %585 = vmatpush3.bf16.msra.mxu1 %v636_v5  ;;  %v638_v7 = vld [vmem:[%s943_s4] ss:$8 sps:$4 sm:$0xff]   ;;  %v640_v8 = vld [vmem:[%s943_s4 + $0x4] ss:$8 sps:$4 sm:$0xff]   ;;  %v646_v30 = vld [vmem:[%s944_s5 + $0x10] sm:$0xff]  }
  0x29   :  { %578 = vmatprep.subr.bf16.mxu0 %v732_v0  ;;  %586 = vmatprep.subr.bf16.mxu1 %v732_v0  ;;  %v65_v9 = vld [vmem:[%s947_s8] ss:$0 sm:$0xff]  ;;  %v66_v22 = vld [vmem:[%s947_s8 + $0x1] ss:$0 sm:$0xff]  ;;  %v647_v31 = vld [vmem:[%s944_s5 + $0x18] sm:$0xff]   ;;  %v203_v39 = vsub.s32 0, %v202_v38 }
  0x2a   :  { %v644_v20 = vld [vmem:[%s944_s5] sm:$0xff]   ;;  %v649_v33 = vld [vmem:[%s944_s5 + $0x28] sm:$0xff]   ;;  %v650_v34 = vld [vmem:[%s944_s5 + $0x30] sm:$0xff]   ;;  %v207_v41 = vsub.s32 1, %v202_v38 }
  0x2b   :  { %v648_v32 = vld [vmem:[%s944_s5 + $0x20] sm:$0xff]   ;;  %v651_v35 = vld [vmem:[%s944_s5 + $0x38] sm:$0xff]   ;;  %v63_v52 = vld [vmem:[#allocation6] sm:$0xff] }
  0x2c   :  { %579 = vmatpush3.bf16.msra.mxu0 %v635_v2  ;;  %587 = vmatpush3.bf16.msra.mxu1 %v637_v6  ;;  %v652_v36 = vld [vmem:[%s945_s6] sm:$0xff]   ;;  %v279_v54 = vmul.f32 %v278_v53, %v63_v52  ;;  %v653_v59 = vld [vmem:[%s945_s6 + $0x8] sm:$0xff]  }
  0x2d   :  { %592 = vmatprep.subr.bf16.mxu1 %v732_v0  ;;  %234 = vmatprep.subr.bf16.mxu0 %v640_v8  ;;  %v529_v40 = vld [vmem:[%s947_s8 + $0x2] ss:$8 sm:$0x3]  ;;  %v69_v60 = vld [vmem:[%s947_s8 + $0x3] ss:$0 sm:$0xff] }
  0x2e   :  { %v204_v42 = vrot.slane %v529_v40, %v203_v39  ;;  %v208_v43 = vrot.slane %v529_v40, %v207_v41  ;;  %v655_v6 = vld [vmem:[%s946_s7 + $0x8] sm:$0xff]  }
  0x2f   :  { %581 = vmatmul.mubr.msk.bf16.vlgmr.msra.gmra.mrb[0].mxu0 %vm89_vm1, %v72_v4  ;;  %v654_v4 = vld [vmem:[%s946_s7] sm:$0xff]   ;;  %s519_s7 = sshll.u32 %s735_s18, 4  ;;  %s520_s7 = int_to_ptr.vmem [resolvable:$true] %s519_s7 }
  0x30   :  { %235 = vmatpush1.bf16.msra.mxu0 %v638_v7  ;;  %266 = vmatprep.mubr.bf16.mxu0 %v734_v19  ;;  %v70_v7 = vld [vmem:[%s947_s8 + $0x4] ss:$0 sm:$0xff]  ;;  %s702_s1 = scalar_lea.vmem %s520_s7, 512  ;;  %p707_p3 = scmp.lt.s32.totalorder %s520_s7, %s520_s7 }
  0x31   :  { %236 = vmatprep.subr.bf16.mxu0 %v643_v17  ;;  %p703_p2 = scmp.ne.s32.totalorder %s520_s7, %s702_s1  ;;  %p708_p4 = scmp.lt.s32.totalorder %s702_s1, %s702_s1 }
  0x33   :  { %p709_p5 = por %p708_p4, %p707_p3 }
  0x34   :  { %237 = vmatpush1.bf16.msra.mxu0 %v641_v18 }
  0x35   :  { %612 = vmatprep.subr.bf16.mxu0 %v732_v0  ;;  %p710_p6 = pnand %p709_p5, %p703_p2 }
 0x102   :  { %v127_v10 = vpop.f32.mrb[0].mxu0 }
 0x103   :  { %v128_v11 = vadd.f32 %v127_v10, %v65_v9  ;;  %v582_v12 = vpop.f32.mrb[1].mxu0 }
 0x104   :  { %v130_v13 = vpop.f32.mrb[2].mxu0 }
 0x105   :  { %v133_v14 = vmax.f32 %v128_v11, 0.0  ;;  %v583_v15 = vpop.f32.mrb[3].mxu0 }
 0x107   :  { %v134_v16 = vpack.c.bf16 %v133_v14, %v133_v14 }
 0x109   :  { %589 = vmatmul.mubr.msk.bf16.vlgmr.msra.gmra.mrb[0].mxu1 %vm89_vm1, %v134_v16 }
 0x10a   :  { %608 = vmatprep.mubr.msk.bf16.mxu1 %vm733_vm0, %v732_v0  ;;  %593 = vmatpush3.bf16.msra.mxu1 %v644_v20 }
 0x10b   :  { %594 = vmatprep.subr.bf16.mxu1 %v732_v0 }
 0x10e   :  { %595 = vmatpush3.bf16.msra.mxu1 %v645_v21 }
 0x10f   :  { %596 = vmatprep.subr.bf16.mxu1 %v732_v0 }
 0x112   :  { %597 = vmatpush3.bf16.msra.mxu1 %v646_v30 }
 0x113   :  { %598 = vmatprep.subr.bf16.mxu1 %v732_v0 }
 0x116   :  { %599 = vmatpush3.bf16.msra.mxu1 %v647_v31 }
 0x117   :  { %600 = vmatprep.subr.bf16.mxu1 %v732_v0 }
 0x11a   :  { %601 = vmatpush3.bf16.msra.mxu1 %v648_v32 }
 0x11b   :  { %602 = vmatprep.subr.bf16.mxu1 %v732_v0 }
 0x11e   :  { %603 = vmatpush3.bf16.msra.mxu1 %v649_v33 }
 0x11f   :  { %604 = vmatprep.subr.bf16.mxu1 %v732_v0 }
 0x122   :  { %605 = vmatpush3.bf16.msra.mxu1 %v650_v34 }
 0x123   :  { %606 = vmatprep.subr.bf16.mxu1 %v732_v0 }
 0x126   :  { %607 = vmatpush3.bf16.msra.mxu1 %v651_v35 }
 0x1dc   :  { %v188_v23 = vpop.f32.mrb[0].mxu1 }
 0x1dd   :  { %v189_v24 = vadd.f32 %v188_v23, %v66_v22  ;;  %v590_v25 = vpop.f32.mrb[1].mxu1 }
 0x1de   :  { %v191_v26 = vpop.f32.mrb[2].mxu1 }
 0x1df   :  { %v194_v27 = vmax.f32 %v189_v24, 0.0  ;;  %v591_v28 = vpop.f32.mrb[3].mxu1 }
 0x1e1   :  { %v195_v29 = vpack.c.bf16 %v194_v27, %v194_v27 }
 0x1e3   :  { %540 = vmatmul.mubr.msk.bf16.vlgmr.msra.gmra.mrb[4].mxu0 %vm89_vm1, %v195_v29 }
 0x1e4   :  { %616 = vmatprep.mubr.msk.bf16.mxu0 %vm733_vm0, %v732_v0  ;;  %613 = vmatpush3.bf16.msra.mxu0 %v652_v36 }
 0x1e5   :  { %614 = vmatprep.subr.bf16.mxu0 %v732_v0 }
 0x1e8   :  { %615 = vmatpush3.bf16.msra.mxu0 %v653_v59 }
 0x1e9   :  { %620 = vmatprep.subr.bf16.mxu0 %v732_v0 }
 0x2b6   :  { %v268_v44 = vpop.f32.mrb[4].mxu0 }
 0x2b7   :  { %v269_v45 = vadd.f32 %v268_v44, %v204_v42  ;;  %v270_v46 = vpop.f32.mrb[5].mxu0 }
 0x2b8   :  { %v271_v47 = vadd.f32 %v270_v46, %v208_v43  ;;  %v272_v48 = vpop.f32.mrb[6].mxu0 }
 0x2b9   :  { %510 = vst [vmem:[#allocation8 + $0x8] sm:$0xff] %v269_v45  ;;  %v273_v49 = vpop.f32.mrb[7].mxu0 }
 0x2ba   :  { %v275_v50 = vmul.f32 0.5, %v271_v47  ;;  %511 = vst [vmem:[#allocation8 + $0x10] sm:$0xff] %v271_v47 }
 0x2bc   :  { %v276_v51 = vmul.f32 1.442695, %v275_v50 }
 0x2be   :  { %656 = vpow2.f32 %v276_v51 }
 0x2c8   :  { %v657_v55 = vpop.eup %656 }
 0x2c9   :  { %v280_v56 = vmul.f32 %v657_v55, %v279_v54 }
 0x2cb   :  { %v281_v57 = vadd.f32 %v280_v56, %v269_v45 }
 0x2cd   :  { %v282_v58 = vpack.c.bf16 %v281_v57, %v281_v57  ;;  %512 = vst [vmem:[#allocation8 + $0x18] sm:$0xff] %v281_v57 }
 0x2cf   :  { %609 = vmatmul.mubr.bf16.vlgmr.msra.gmra.mrb[4].mxu1 %v282_v58 }
 0x3a2   :  { %v381_v61 = vpop.f32.mrb[4].mxu1 }
 0x3a3   :  { %v382_v62 = vadd.f32 %v381_v61, %v69_v60  ;;  %v610_v63 = vpop.f32.mrb[5].mxu1 }
 0x3a4   :  { %v384_v1 = vpop.f32.mrb[6].mxu1 }
 0x3a5   :  { %v387_v2 = vmax.f32 %v382_v62, 0.0  ;;  %v611_v3 = vpop.f32.mrb[7].mxu1 }
 0x3a7   :  { %v388_v5 = vpack.c.bf16 %v387_v2, %v387_v2 }
 0x3a9   :  { %617 = vmatmul.mubr.msk.bf16.vlgmr.msra.gmra.mrb[8].mxu0 %vm89_vm1, %v388_v5 }
 0x3aa   :  { %621 = vmatpush3.bf16.msra.mxu0 %v654_v4  ;;  %624 = vmatprep.mubr.msk.bf16.mxu0 %vm733_vm0, %v732_v0 }
 0x3ab   :  { %622 = vmatprep.subr.bf16.mxu0 %v732_v0  ;;  %v71_v0 = vld [vmem:[%s947_s8 + $0x5] ss:$0 sm:$0xff] }
 0x3ae   :  { %623 = vmatpush3.bf16.msra.mxu0 %v655_v6 }
 0x47c   :  { %v442_v8 = vpop.f32.mrb[8].mxu0 }
 0x47d   :  { %v443_v9 = vadd.f32 %v442_v8, %v70_v7  ;;  %v618_v10 = vpop.f32.mrb[9].mxu0 }
 0x47e   :  { %v445_v11 = vpop.f32.mrb[10].mxu0 }
 0x47f   :  { %v448_v12 = vmax.f32 %v443_v9, 0.0  ;;  %v619_v13 = vpop.f32.mrb[11].mxu0 }
 0x481   :  { %v449_v14 = vpack.c.bf16 %v448_v12, %v448_v12 }
 0x483   :  { %625 = vmatmul.mubr.msk.bf16.vlgmr.msra.gmra.mrb[12].mxu0 %vm89_vm1, %v449_v14 }
 0x556   :  { %v503_v15 = vpop.f32.mrb[12].mxu0 }
 0x557   :  { %v504_v16 = vadd.f32 %v503_v15, %v71_v0  ;;  %v626_v17 = vpop.f32.mrb[13].mxu0 }
 0x558   :  { %v506_v18 = vpop.f32.mrb[14].mxu0 }
 0x559   :  { %509 = vst [vmem:[#allocation8] sm:$0xff] %v504_v16  ;;  %v627_v19 = vpop.f32.mrb[15].mxu0 }
 0x55a   :  { %713 = shalt.err (!%p710_p6)
}
 0x55b   :  { %s714_s8 = scalar_lea.hbm %s949_s10, 512 }
 0x55c   :  { %p715_p7 = scmp.ne.s32.totalorder %s949_s10, %s714_s8  ;;  %p718_p8 = scmp.lt.u32.totalorder %s714_s8, %s949_s10 }
 0x55e   :  { %p720_p9 = pnand %p718_p8, %p715_p7 }
 0x560   :  { %723 = shalt.err (!%p720_p9)
}
 0x561   :  { %522 = dma.vmem_to_hbm [thread:$0]  %s520_s7, 512, %s949_s10, [#allocation5]  }
 0x562   :  { %728 = dma.done.wait [#allocation5], 512  }
 0x563   :  { %729 = vsyncadd [#allocation5], 4294966784 }
 0x564   :  { %526 = vsyncpa [#allocation4], 1 }
 0x565   :  { %527 = vsyncpa [#allocation7], 1 }
 0x566   :  { %528 = vsyncpa [#allocation5], 1 }

// kernel: tpu_custom_call.1
= control target key start
LH: loop header
LB: loop body
LE: loop exit
PB: predicated region body
PF: predicated region fallthrough
CT: control target
= control target key end

     0   :  { %16 = vsyncpa [#allocation4], 0  ;;  %s939_s0 = inlined_call_operand.hbm [shape: f32[8,32], index: 0, kind: input, shape index: {}]   ;;  %s940_s1 = inlined_call_operand.hbm [shape: f32[8,128], index: 1, kind: input, shape index: {}]   ;;  %s941_s2 = inlined_call_operand.vmem [shape: bf16[32,32], index: 2, kind: input, shape index: {}]   ;;  %s942_s3 = inlined_call_operand.vmem [shape: bf16[32,32], index: 3, kind: input, shape index: {}]   ;;  %s943_s4 = inlined_call_operand.vmem [shape: bf16[32,256], index: 4, kind: input, shape index: {}]   ;;  %s944_s5 = inlined_call_operand.vmem [shape: bf16[128,32], index: 5, kind: input, shape index: {}]   ;;  %s945_s6 = inlined_call_operand.vmem [shape: bf16[32,32], index: 6, kind: input, shape index: {}]   ;;  %s946_s7 = inlined_call_operand.vmem [shape: bf16[32,128], index: 7, kind: input, shape index: {}]   ;;  %s947_s8 = inlined_call_operand.vmem [shape: f32[8,256], index: 8, kind: input, shape index: {}]   ;;  %s948_s9 = inlined_call_operand.<no memory space> [shape: f32[1], index: 9, kind: input, shape index: {}]   ;;  %s949_s10 = inlined_call_operand.hbm [shape: f32[8,512], index: 10, kind: output, shape index: {}]  }
   0x1   :  { %17 = vsyncpa [#allocation7], 0 }
   0x2   :  { %18 = vsyncpa [#allocation5], 0  ;;  %s730_s13 = smov [#allocation3]   ;;  %s731_s15 = smov [#allocation6]  }
   0x3   :  { %s25_s14 = sshll.u32 %s730_s13, 4  ;;  %s35_s16 = sshll.u32 %s731_s15, 4  ;;  %s26_s14 = int_to_ptr.vmem [resolvable:$true] %s25_s14  ;;  %s36_s16 = int_to_ptr.vmem [resolvable:$true] %s35_s16 }
   0x4   :  { %s658_s19 = scalar_lea.hbm %s939_s0, 128 }
   0x5   :  { %p659_p0 = scmp.ne.s32.totalorder %s939_s0, %s658_s19  ;;  %p662_p1 = scmp.lt.u32.totalorder %s658_s19, %s939_s0 }
   0x7   :  { %p664_p2 = pnand %p662_p1, %p659_p0 }
   0x9   :  { %667 = shalt.err (!%p664_p2)
}
   0xa   :  { %s668_s24 = scalar_lea.vmem %s26_s14, 128  ;;  %p673_p4 = scmp.lt.s32.totalorder %s26_s14, %s26_s14 }
   0xb   :  { %p669_p3 = scmp.ne.s32.totalorder %s26_s14, %s668_s24  ;;  %p674_p5 = scmp.lt.s32.totalorder %s668_s24, %s668_s24 }
   0xd   :  { %p675_p6 = por %p674_p5, %p673_p4 }
   0xf   :  { %p676_p7 = pnand %p675_p6, %p669_p3 }
  0x11   :  { %679 = shalt.err (!%p676_p7)
}
  0x12   :  { %28 = dma.hbm_to_vmem [thread:$0]  %s939_s0, 128, %s26_s14, [#allocation4]  }
  0x13   :  { %s680_s29 = scalar_lea.hbm %s940_s1, 128 }
  0x14   :  { %p681_p8 = scmp.ne.s32.totalorder %s940_s1, %s680_s29  ;;  %p684_p9 = scmp.lt.u32.totalorder %s680_s29, %s940_s1 }
  0x16   :  { %p686_p10 = pnand %p684_p9, %p681_p8 }
  0x18   :  { %689 = shalt.err (!%p686_p10)
}
  0x19   :  { %s690_s15 = scalar_lea.vmem %s36_s16, 128  ;;  %p695_p12 = scmp.lt.s32.totalorder %s36_s16, %s36_s16 }
  0x1a   :  { %p691_p11 = scmp.ne.s32.totalorder %s36_s16, %s690_s15  ;;  %p696_p13 = scmp.lt.s32.totalorder %s690_s15, %s690_s15 }
  0x1c   :  { %p697_p0 = por %p696_p13, %p695_p12 }
  0x1e   :  { %p698_p1 = pnand %p697_p0, %p691_p11 }
  0x20   :  { %701 = shalt.err (!%p698_p1)
}
  0x21   :  { %38 = dma.hbm_to_vmem [thread:$0]  %s940_s1, 128, %s36_s16, [#allocation7]  }
  0x22   :  { %724 = dma.done.wait [#allocation4], 128  }
  0x23   :  { %725 = vsyncadd [#allocation4], 4294967168 }
  0x24   :  { %726 = dma.done.wait [#allocation7], 128  }
  0x25   :  { %727 = vsyncadd [#allocation7], 4294967168  ;;  %v732_v0 = vmov 0.0   ;;  %vm733_vm0 = vmmov 0   ;;  %v634_v1 = vld [vmem:[%s941_s2] sm:$0xff]   ;;  %v635_v2 = vld [vmem:[%s941_s2 + $0x8] sm:$0xff]   ;;  %v201_v37 = vlaneseq  ;;  %v278_v53 = vstv %s948_s9 }
  0x26   :  { %576 = vmatprep.subr.bf16.mxu0 %v732_v0  ;;  %580 = vmatprep.mubr.msk.bf16.mxu0 %vm733_vm0, %v732_v0  ;;  %v62_v3 = vld [vmem:[#allocation3] sm:$0xff]  ;;  %vm89_vm1 = vcmask 261120   ;;  %v637_v6 = vld [vmem:[%s942_s3 + $0x8] sm:$0xff]   ;;  %v643_v17 = vld [vmem:[%s943_s4 + $0x14] ss:$8 sps:$4 sm:$0xff]   ;;  %v734_v19 = vmov 0  }
  0x27   :  { %584 = vmatprep.subr.bf16.mxu1 %v732_v0  ;;  %588 = vmatprep.mubr.msk.bf16.mxu1 %vm733_vm0, %v732_v0  ;;  %v72_v4 = vpack.c.bf16 %v62_v3, %v62_v3  ;;  %v636_v5 = vld [vmem:[%s942_s3] sm:$0xff]   ;;  %v641_v18 = vld [vmem:[%s943_s4 + $0x10] ss:$8 sps:$4 sm:$0xff]   ;;  %v645_v21 = vld [vmem:[%s944_s5 + $0x8] sm:$0xff]   ;;  %v202_v38 = vshrl.u32 %v201_v37, 7  ;;  %s735_s18 = smov [#allocation8]  }
  0x28   :  { %577 = vmatpush3.bf16.msra.mxu0 %v634_v1  ;;  %585 = vmatpush3.bf16.msra.mxu1 %v636_v5  ;;  %v638_v7 = vld [vmem:[%s943_s4] ss:$8 sps:$4 sm:$0xff]   ;;  %v640_v8 = vld [vmem:[%s943_s4 + $0x4] ss:$8 sps:$4 sm:$0xff]   ;;  %v646_v30 = vld [vmem:[%s944_s5 + $0x10] sm:$0xff]  }
  0x29   :  { %578 = vmatprep.subr.bf16.mxu0 %v732_v0  ;;  %586 = vmatprep.subr.bf16.mxu1 %v732_v0  ;;  %v65_v9 = vld [vmem:[%s947_s8] ss:$0 sm:$0xff]  ;;  %v66_v22 = vld [vmem:[%s947_s8 + $0x1] ss:$0 sm:$0xff]  ;;  %v647_v31 = vld [vmem:[%s944_s5 + $0x18] sm:$0xff]   ;;  %v203_v39 = vsub.s32 0, %v202_v38 }
  0x2a   :  { %v644_v20 = vld [vmem:[%s944_s5] sm:$0xff]   ;;  %v649_v33 = vld [vmem:[%s944_s5 + $0x28] sm:$0xff]   ;;  %v650_v34 = vld [vmem:[%s944_s5 + $0x30] sm:$0xff]   ;;  %v207_v41 = vsub.s32 1, %v202_v38 }
  0x2b   :  { %v648_v32 = vld [vmem:[%s944_s5 + $0x20] sm:$0xff]   ;;  %v651_v35 = vld [vmem:[%s944_s5 + $0x38] sm:$0xff]   ;;  %v63_v52 = vld [vmem:[#allocation6] sm:$0xff] }
  0x2c   :  { %579 = vmatpush3.bf16.msra.mxu0 %v635_v2  ;;  %587 = vmatpush3.bf16.msra.mxu1 %v637_v6  ;;  %v652_v36 = vld [vmem:[%s945_s6] sm:$0xff]   ;;  %v279_v54 = vmul.f32 %v278_v53, %v63_v52  ;;  %v653_v59 = vld [vmem:[%s945_s6 + $0x8] sm:$0xff]  }
  0x2d   :  { %592 = vmatprep.subr.bf16.mxu1 %v732_v0  ;;  %234 = vmatprep.subr.bf16.mxu0 %v640_v8  ;;  %v529_v40 = vld [vmem:[%s947_s8 + $0x2] ss:$8 sm:$0x3]  ;;  %v69_v60 = vld [vmem:[%s947_s8 + $0x3] ss:$0 sm:$0xff] }
  0x2e   :  { %v204_v42 = vrot.slane %v529_v40, %v203_v39  ;;  %v208_v43 = vrot.slane %v529_v40, %v207_v41  ;;  %v655_v6 = vld [vmem:[%s946_s7 + $0x8] sm:$0xff]  }
  0x2f   :  { %581 = vmatmul.mubr.msk.bf16.vlgmr.msra.gmra.mrb[0].mxu0 %vm89_vm1, %v72_v4  ;;  %v654_v4 = vld [vmem:[%s946_s7] sm:$0xff]   ;;  %s519_s7 = sshll.u32 %s735_s18, 4  ;;  %s520_s7 = int_to_ptr.vmem [resolvable:$true] %s519_s7 }
  0x30   :  { %235 = vmatpush1.bf16.msra.mxu0 %v638_v7  ;;  %266 = vmatprep.mubr.bf16.mxu0 %v734_v19  ;;  %v70_v7 = vld [vmem:[%s947_s8 + $0x4] ss:$0 sm:$0xff]  ;;  %s702_s1 = scalar_lea.vmem %s520_s7, 512  ;;  %p707_p3 = scmp.lt.s32.totalorder %s520_s7, %s520_s7 }
  0x31   :  { %236 = vmatprep.subr.bf16.mxu0 %v643_v17  ;;  %p703_p2 = scmp.ne.s32.totalorder %s520_s7, %s702_s1  ;;  %p708_p4 = scmp.lt.s32.totalorder %s702_s1, %s702_s1 }
  0x33   :  { %p709_p5 = por %p708_p4, %p707_p3 }
  0x34   :  { %237 = vmatpush1.bf16.msra.mxu0 %v641_v18 }
  0x35   :  { %612 = vmatprep.subr.bf16.mxu0 %v732_v0  ;;  %p710_p6 = pnand %p709_p5, %p703_p2 }
 0x102   :  { %v127_v10 = vpop.f32.mrb[0].mxu0 }
 0x103   :  { %v128_v11 = vadd.f32 %v127_v10, %v65_v9  ;;  %v582_v12 = vpop.f32.mrb[1].mxu0 }
 0x104   :  { %v130_v13 = vpop.f32.mrb[2].mxu0 }
 0x105   :  { %v133_v14 = vmax.f32 %v128_v11, 0.0  ;;  %v583_v15 = vpop.f32.mrb[3].mxu0 }
 0x107   :  { %v134_v16 = vpack.c.bf16 %v133_v14, %v133_v14 }
 0x109   :  { %589 = vmatmul.mubr.msk.bf16.vlgmr.msra.gmra.mrb[0].mxu1 %vm89_vm1, %v134_v16 }
 0x10a   :  { %608 = vmatprep.mubr.msk.bf16.mxu1 %vm733_vm0, %v732_v0  ;;  %593 = vmatpush3.bf16.msra.mxu1 %v644_v20 }
 0x10b   :  { %594 = vmatprep.subr.bf16.mxu1 %v732_v0 }
 0x10e   :  { %595 = vmatpush3.bf16.msra.mxu1 %v645_v21 }
 0x10f   :  { %596 = vmatprep.subr.bf16.mxu1 %v732_v0 }
 0x112   :  { %597 = vmatpush3.bf16.msra.mxu1 %v646_v30 }
 0x113   :  { %598 = vmatprep.subr.bf16.mxu1 %v732_v0 }
 0x116   :  { %599 = vmatpush3.bf16.msra.mxu1 %v647_v31 }
 0x117   :  { %600 = vmatprep.subr.bf16.mxu1 %v732_v0 }
 0x11a   :  { %601 = vmatpush3.bf16.msra.mxu1 %v648_v32 }
 0x11b   :  { %602 = vmatprep.subr.bf16.mxu1 %v732_v0 }
 0x11e   :  { %603 = vmatpush3.bf16.msra.mxu1 %v649_v33 }
 0x11f   :  { %604 = vmatprep.subr.bf16.mxu1 %v732_v0 }
 0x122   :  { %605 = vmatpush3.bf16.msra.mxu1 %v650_v34 }
 0x123   :  { %606 = vmatprep.subr.bf16.mxu1 %v732_v0 }
 0x126   :  { %607 = vmatpush3.bf16.msra.mxu1 %v651_v35 }
 0x1dc   :  { %v188_v23 = vpop.f32.mrb[0].mxu1 }
 0x1dd   :  { %v189_v24 = vadd.f32 %v188_v23, %v66_v22  ;;  %v590_v25 = vpop.f32.mrb[1].mxu1 }
 0x1de   :  { %v191_v26 = vpop.f32.mrb[2].mxu1 }
 0x1df   :  { %v194_v27 = vmax.f32 %v189_v24, 0.0  ;;  %v591_v28 = vpop.f32.mrb[3].mxu1 }
 0x1e1   :  { %v195_v29 = vpack.c.bf16 %v194_v27, %v194_v27 }
 0x1e3   :  { %540 = vmatmul.mubr.msk.bf16.vlgmr.msra.gmra.mrb[4].mxu0 %vm89_vm1, %v195_v29 }
 0x1e4   :  { %616 = vmatprep.mubr.msk.bf16.mxu0 %vm733_vm0, %v732_v0  ;;  %613 = vmatpush3.bf16.msra.mxu0 %v652_v36 }
 0x1e5   :  { %614 = vmatprep.subr.bf16.mxu0 %v732_v0 }
 0x1e8   :  { %615 = vmatpush3.bf16.msra.mxu0 %v653_v59 }
 0x1e9   :  { %620 = vmatprep.subr.bf16.mxu0 %v732_v0 }
 0x2b6   :  { %v268_v44 = vpop.f32.mrb[4].mxu0 }
 0x2b7   :  { %v269_v45 = vadd.f32 %v268_v44, %v204_v42  ;;  %v270_v46 = vpop.f32.mrb[5].mxu0 }
 0x2b8   :  { %v271_v47 = vadd.f32 %v270_v46, %v208_v43  ;;  %v272_v48 = vpop.f32.mrb[6].mxu0 }
 0x2b9   :  { %510 = vst [vmem:[#allocation8 + $0x8] sm:$0xff] %v269_v45  ;;  %v273_v49 = vpop.f32.mrb[7].mxu0 }
 0x2ba   :  { %v275_v50 = vmul.f32 0.5, %v271_v47  ;;  %511 = vst [vmem:[#allocation8 + $0x10] sm:$0xff] %v271_v47 }
 0x2bc   :  { %v276_v51 = vmul.f32 1.442695, %v275_v50 }
 0x2be   :  { %656 = vpow2.f32 %v276_v51 }
 0x2c8   :  { %v657_v55 = vpop.eup %656 }
 0x2c9   :  { %v280_v56 = vmul.f32 %v657_v55, %v279_v54 }
 0x2cb   :  { %v281_v57 = vadd.f32 %v280_v56, %v269_v45 }
 0x2cd   :  { %v282_v58 = vpack.c.bf16 %v281_v57, %v281_v57  ;;  %512 = vst [vmem:[#allocation8 + $0x18] sm:$0xff] %v281_v57 }
 0x2cf   :  { %609 = vmatmul.mubr.bf16.vlgmr.msra.gmra.mrb[4].mxu1 %v282_v58 }
 0x3a2   :  { %v381_v61 = vpop.f32.mrb[4].mxu1 }
 0x3a3   :  { %v382_v62 = vadd.f32 %v381_v61, %v69_v60  ;;  %v610_v63 = vpop.f32.mrb[5].mxu1 }
 0x3a4   :  { %v384_v1 = vpop.f32.mrb[6].mxu1 }
 0x3a5   :  { %v387_v2 = vmax.f32 %v382_v62, 0.0  ;;  %v611_v3 = vpop.f32.mrb[7].mxu1 }
 0x3a7   :  { %v388_v5 = vpack.c.bf16 %v387_v2, %v387_v2 }
 0x3a9   :  { %617 = vmatmul.mubr.msk.bf16.vlgmr.msra.gmra.mrb[8].mxu0 %vm89_vm1, %v388_v5 }
 0x3aa   :  { %621 = vmatpush3.bf16.msra.mxu0 %v654_v4  ;;  %624 = vmatprep.mubr.msk.bf16.mxu0 %vm733_vm0, %v732_v0 }
 0x3ab   :  { %622 = vmatprep.subr.bf16.mxu0 %v732_v0  ;;  %v71_v0 = vld [vmem:[%s947_s8 + $0x5] ss:$0 sm:$0xff] }
 0x3ae   :  { %623 = vmatpush3.bf16.msra.mxu0 %v655_v6 }
 0x47c   :  { %v442_v8 = vpop.f32.mrb[8].mxu0 }
 0x47d   :  { %v443_v9 = vadd.f32 %v442_v8, %v70_v7  ;;  %v618_v10 = vpop.f32.mrb[9].mxu0 }
 0x47e   :  { %v445_v11 = vpop.f32.mrb[10].mxu0 }
 0x47f   :  { %v448_v12 = vmax.f32 %v443_v9, 0.0  ;;  %v619_v13 = vpop.f32.mrb[11].mxu0 }
 0x481   :  { %v449_v14 = vpack.c.bf16 %v448_v12, %v448_v12 }
 0x483   :  { %625 = vmatmul.mubr.msk.bf16.vlgmr.msra.gmra.mrb[12].mxu0 %vm89_vm1, %v449_v14 }
 0x556   :  { %v503_v15 = vpop.f32.mrb[12].mxu0 }
 0x557   :  { %v504_v16 = vadd.f32 %v503_v15, %v71_v0  ;;  %v626_v17 = vpop.f32.mrb[13].mxu0 }
 0x558   :  { %v506_v18 = vpop.f32.mrb[14].mxu0 }
 0x559   :  { %509 = vst [vmem:[#allocation8] sm:$0xff] %v504_v16  ;;  %v627_v19 = vpop.f32.mrb[15].mxu0 }
 0x55a   :  { %713 = shalt.err (!%p710_p6)
}
 0x55b   :  { %s714_s8 = scalar_lea.hbm %s949_s10, 512 }
 0x55c   :  { %p715_p7 = scmp.ne.s32.totalorder %s949_s10, %s714_s8  ;;  %p718_p8 = scmp.lt.u32.totalorder %s714_s8, %s949_s10 }
 0x55e   :  { %p720_p9 = pnand %p718_p8, %p715_p7 }
 0x560   :  { %723 = shalt.err (!%p720_p9)
}
 0x561   :  { %522 = dma.vmem_to_hbm [thread:$0]  %s520_s7, 512, %s949_s10, [#allocation5]  }
 0x562   :  { %728 = dma.done.wait [#allocation5], 512  }
 0x563   :  { %729 = vsyncadd [#allocation5], 4294966784 }
 0x564   :  { %526 = vsyncpa [#allocation4], 1 }
 0x565   :  { %527 = vsyncpa [#allocation7], 1 }
 0x566   :  { %528 = vsyncpa [#allocation5], 1 }

</bundles_post_ra>
